<compile_context>
chip_gen: v7x
topology: tpu7x:2x2x1
jax: 0.10.0
libtpu: 0.0.40
codegen_flags: <defaults>
</compile_context>

<pallas_src>
import jax
import jax.numpy as jnp
from jax.experimental import pallas as pl
from jax.experimental.pallas import tpu as pltpu

LANE = 128
SUBLANE = 8


def _round_up(x, m):
    return ((x + m - 1) // m) * m


# ----------------------------------------------------------------------------
# Kernel 1: one GCN layer, tiled:  H[i] = relu( sum_k A[i,k] @ (X[k] @ W) + b )
# grid = (row tiles of A, reduction tiles over A columns); reduction axis last.
# ----------------------------------------------------------------------------
def gcn_layer_kernel(a_ref, x_ref, w_ref, b_ref, o_ref, acc_ref):
    k = pl.program_id(1)

    @pl.when(k == 0)
    def _():
        acc_ref[...] = jnp.zeros_like(acc_ref)

    xw = jnp.dot(x_ref[...], w_ref[...], preferred_element_type=jnp.float32)
    acc_ref[...] += jnp.dot(a_ref[...], xw.astype(jnp.bfloat16),
                            preferred_element_type=jnp.float32)

    @pl.when(k == pl.num_programs(1) - 1)
    def _():
        o_ref[...] = jnp.maximum(acc_ref[...] + b_ref[...], 0.0).astype(o_ref.dtype)


def gcn_layer(A, X, W, b, *, tm, tk):
    n_pad = A.shape[0]
    cin_p = X.shape[1]
    hid_p = W.shape[1]
    grid = (n_pad // tm, n_pad // tk)
    flops = 2 * n_pad * n_pad * hid_p + 2 * grid[0] * n_pad * cin_p * hid_p
    bytes_accessed = (A.size * 2 + grid[0] * X.size * 2 + W.size * 2
                      + b.size * 4 + n_pad * hid_p * 2)
    return pl.pallas_call(
        gcn_layer_kernel,
        out_shape=jax.ShapeDtypeStruct((n_pad, hid_p), jnp.bfloat16),
        grid_spec=pltpu.PrefetchScalarGridSpec(
            num_scalar_prefetch=0,
            grid=grid,
            in_specs=[pl.BlockSpec((tm, tk), lambda i, k: (i, k)),
                      pl.BlockSpec((tk, cin_p), lambda i, k: (k, 0)),
                      pl.BlockSpec((cin_p, hid_p), lambda i, k: (0, 0)),
                      pl.BlockSpec((1, hid_p), lambda i, k: (0, 0))],
            out_specs=pl.BlockSpec((tm, hid_p), lambda i, k: (i, 0)),
            scratch_shapes=[pltpu.VMEM((tm, hid_p), jnp.float32)]),
        compiler_params=pltpu.CompilerParams(
            dimension_semantics=("parallel", "arbitrary")),
        cost_estimate=pl.CostEstimate(flops=int(flops), transcendentals=0,
                                      bytes_accessed=int(bytes_accessed)),
    )(A, X, W, b)


# ----------------------------------------------------------------------------
# Kernel 2: second GCN layer fused with global mean pool and both heads.
#   per row tile i (reduction over k):  H2_i = relu(sum_k A[i,k]@(H1[k]@W2)+b2)
#   pooled += P[:, i_tile] @ H2_i      (f32 VMEM accumulator, carried over i)
#   at the very last grid step:        out = pooled @ [Wmu|Wlv] + [bmu|blv]
# ----------------------------------------------------------------------------
def gcn_pool_heads_kernel(a_ref, h_ref, w2_ref, b2_ref, p_ref, wh_ref, bh_ref,
                          o_ref, acc_ref, pool_ref):
    i = pl.program_id(0)
    k = pl.program_id(1)
    last_i = pl.num_programs(0) - 1
    last_k = pl.num_programs(1) - 1

    @pl.when(jnp.logical_and(i == 0, k == 0))
    def _():
        pool_ref[...] = jnp.zeros_like(pool_ref)

    @pl.when(k == 0)
    def _():
        acc_ref[...] = jnp.zeros_like(acc_ref)

    hw = jnp.dot(h_ref[...], w2_ref[...], preferred_element_type=jnp.float32)
    acc_ref[...] += jnp.dot(a_ref[...], hw.astype(jnp.bfloat16),
                            preferred_element_type=jnp.float32)

    @pl.when(k == last_k)
    def _():
        h2 = jnp.maximum(acc_ref[...] + b2_ref[...], 0.0)
        pool_ref[...] += jnp.dot(p_ref[...], h2.astype(jnp.bfloat16),
                                 preferred_element_type=jnp.float32)

    @pl.when(jnp.logical_and(i == last_i, k == last_k))
    def _():
        o_ref[...] = (jnp.dot(pool_ref[...], wh_ref[...],
                              preferred_element_type=jnp.float32)
                      + bh_ref[...]).astype(o_ref.dtype)


def gcn_pool_heads(A, H, W2, b2, P, Wh, bh, *, tm, tk):
    n_pad = A.shape[0]
    hid_p = W2.shape[1]
    g_pad = P.shape[0]
    two_out = Wh.shape[1]
    grid = (n_pad // tm, n_pad // tk)
    flops = (2 * n_pad * n_pad * hid_p
             + 2 * grid[0] * n_pad * hid_p * hid_p
             + 2 * g_pad * n_pad * hid_p
             + 2 * g_pad * hid_p * two_out)
    bytes_accessed = (A.size * 2 + grid[0] * H.size * 2 + W2.size * 2
                      + P.size * 2 + Wh.size * 4 + g_pad * two_out * 4)
    return pl.pallas_call(
        gcn_pool_heads_kernel,
        out_shape=jax.ShapeDtypeStruct((g_pad, two_out), jnp.float32),
        grid_spec=pltpu.PrefetchScalarGridSpec(
            num_scalar_prefetch=0,
            grid=grid,
            in_specs=[pl.BlockSpec((tm, tk), lambda i, k: (i, k)),
                      pl.BlockSpec((tk, hid_p), lambda i, k: (k, 0)),
                      pl.BlockSpec((hid_p, hid_p), lambda i, k: (0, 0)),
                      pl.BlockSpec((1, hid_p), lambda i, k: (0, 0)),
                      pl.BlockSpec((g_pad, tm), lambda i, k: (0, i)),
                      pl.BlockSpec((hid_p, two_out), lambda i, k: (0, 0)),
                      pl.BlockSpec((1, two_out), lambda i, k: (0, 0))],
            out_specs=pl.BlockSpec((g_pad, two_out), lambda i, k: (0, 0)),
            scratch_shapes=[pltpu.VMEM((tm, hid_p), jnp.float32),
                            pltpu.VMEM((g_pad, hid_p), jnp.float32)]),
        compiler_params=pltpu.CompilerParams(
            dimension_semantics=("arbitrary", "arbitrary")),
        cost_estimate=pl.CostEstimate(flops=int(flops), transcendentals=0,
                                      bytes_accessed=int(bytes_accessed)),
    )(A, H, W2, b2, P, Wh, bh)


# ----------------------------------------------------------------------------
# Plain-JAX glue: normalized adjacency / mean-pool matrix (graph preprocessing)
# ----------------------------------------------------------------------------
def normalized_adjacency(edge_index, num_nodes):
    """D^{-1/2} (A + I) D^{-1/2}, matching PyG GCNConv default normalization."""
    src, dst = edge_index[0], edge_index[1]
    A = jnp.zeros((num_nodes, num_nodes), jnp.float32)
    A = A.at[dst, src].add(1.0)                      # message flows src -> dst
    A = A + jnp.eye(num_nodes, dtype=jnp.float32)    # self loops
    deg = A.sum(axis=1)
    dinv = jax.lax.rsqrt(deg)
    return A * dinv[:, None] * dinv[None, :]


def mean_pool_matrix(batch, num_graphs):
    onehot = (batch[None, :] == jnp.arange(num_graphs)[:, None]).astype(jnp.float32)
    counts = onehot.sum(axis=1, keepdims=True)
    return onehot / jnp.maximum(counts, 1.0)


# ----------------------------------------------------------------------------
# Parameter prep: pad to lane multiples, fuse heads, cast node-dim weights bf16
# ----------------------------------------------------------------------------
def prepare_params(params, in_channels, hidden_channels, out_channels):
    cin_p = _round_up(in_channels, LANE)
    hid_p = _round_up(hidden_channels, LANE)
    out_p = _round_up(out_channels, LANE)

    def pad2(w, r, c):
        return jnp.zeros((r, c), jnp.float32).at[:w.shape[0], :w.shape[1]].set(w)

    W1 = pad2(params["W1"], cin_p, hid_p).astype(jnp.bfloat16)
    b1 = jnp.zeros((1, hid_p), jnp.float32).at[0, :hidden_channels].set(params["b1"])
    W2 = pad2(params["W2"], hid_p, hid_p).astype(jnp.bfloat16)
    b2 = jnp.zeros((1, hid_p), jnp.float32).at[0, :hidden_channels].set(params["b2"])

    Wh = jnp.zeros((hid_p, 2 * out_p), jnp.float32)
    Wh = Wh.at[:hidden_channels, :out_channels].set(params["Wmu"])
    Wh = Wh.at[:hidden_channels, out_p:out_p + out_channels].set(params["Wlv"])
    bh = jnp.zeros((1, 2 * out_p), jnp.float32)
    bh = bh.at[0, :out_channels].set(params["bmu"])
    bh = bh.at[0, out_p:out_p + out_channels].set(params["blv"])

    return dict(W1=W1, b1=b1, W2=W2, b2=b2, Wh=Wh, bh=bh,
                cin_p=cin_p, hid_p=hid_p, out_p=out_p,
                out_channels=out_channels)


# ----------------------------------------------------------------------------
# Encoder forward
# ----------------------------------------------------------------------------
def encoder_forward(x, edge_index, batch, num_graphs, prep, *, tile_n=256):
    N, cin = x.shape
    n_pad = _round_up(N, tile_n)
    g_pad = _round_up(num_graphs, SUBLANE)

    A = normalized_adjacency(edge_index, N)
    A_pad = (jnp.zeros((n_pad, n_pad), jnp.float32)
             .at[:N, :N].set(A).astype(jnp.bfloat16))
    X_pad = (jnp.zeros((n_pad, prep["cin_p"]), jnp.float32)
             .at[:N, :cin].set(x).astype(jnp.bfloat16))
    P = mean_pool_matrix(batch, num_graphs)
    P_pad = (jnp.zeros((g_pad, n_pad), jnp.float32)
             .at[:num_graphs, :N].set(P).astype(jnp.bfloat16))

    H1 = gcn_layer(A_pad, X_pad, prep["W1"], prep["b1"], tm=tile_n, tk=tile_n)
    out = gcn_pool_heads(A_pad, H1, prep["W2"], prep["b2"], P_pad,
                         prep["Wh"], prep["bh"], tm=tile_n, tk=tile_n)

    oc, op = prep["out_channels"], prep["out_p"]
    mu = out[:num_graphs, :oc]
    logvar = out[:num_graphs, op:op + oc]
    return mu, logvar


def encoder_reference(x, edge_index, batch, num_graphs, params):
    """Pure-JAX f32 reference for validation."""
    A = normalized_adjacency(edge_index, x.shape[0])
    P = mean_pool_matrix(batch, num_graphs)
    h1 = jax.nn.relu(A @ (x @ params["W1"]) + params["b1"])
    h2 = jax.nn.relu(A @ (h1 @ params["W2"]) + params["b2"])
    pooled = P @ h2
    mu = pooled @ params["Wmu"] + params["bmu"]
    logvar = pooled @ params["Wlv"] + params["blv"]
    return mu, logvar


def init_params(key, in_channels, hidden_channels, out_channels):
    ks = jax.random.split(key, 8)

    def glorot(k, shape):
        fan_in, fan_out = shape
        lim = jnp.sqrt(6.0 / (fan_in + fan_out))
        return jax.random.uniform(k, shape, jnp.float32, -lim, lim)

    return {
        "W1": glorot(ks[0], (in_channels, hidden_channels)),
        "b1": jnp.zeros((hidden_channels,), jnp.float32),
        "W2": glorot(ks[1], (hidden_channels, hidden_channels)),
        "b2": jnp.zeros((hidden_channels,), jnp.float32),
        "Wmu": glorot(ks[2], (hidden_channels, out_channels)),
        "bmu": jax.random.normal(ks[3], (out_channels,), jnp.float32) * 0.01,
        "Wlv": glorot(ks[4], (hidden_channels, out_channels)),
        "blv": jax.random.normal(ks[5], (out_channels,), jnp.float32) * 0.01,
    }


if __name__ == "__main__":
    key = jax.random.PRNGKey(0)
    k_x, k_p = jax.random.split(key)

    # Small synthetic graph batch: 2 ring graphs x 4 nodes, 8 nodes total.
    N, IN_C, HID_C, OUT_C, G = 8, 4, 32, 16, 2

    x = jax.random.normal(k_x, (N, IN_C), jnp.float32)
    src = jnp.array([0, 1, 2, 3, 1, 2, 3, 0, 4, 5, 6, 7, 5, 6, 7, 4], jnp.int32)
    dst = jnp.array([1, 2, 3, 0, 0, 1, 2, 3, 5, 6, 7, 4, 4, 5, 6, 7], jnp.int32)
    edge_index = jnp.stack([src, dst])                      # (2, E)
    batch = jnp.array([0, 0, 0, 0, 1, 1, 1, 1], jnp.int32)  # graph assignment

    params = init_params(k_p, IN_C, HID_C, OUT_C)
    prep = prepare_params(params, IN_C, HID_C, OUT_C)

    mu, logvar = encoder_forward(x, edge_index, batch, G, prep)
    jax.block_until_ready((mu, logvar))

    assert mu.shape == (G, OUT_C) and logvar.shape == (G, OUT_C)
    assert jnp.all(jnp.isfinite(mu)) and jnp.all(jnp.isfinite(logvar))

    # Validate against the f32 pure-JAX reference (bf16 inputs -> loose tol).
    mu_ref, lv_ref = encoder_reference(x, edge_index, batch, G, params)
    assert jnp.allclose(mu, mu_ref, atol=1e-1, rtol=1e-1)
    assert jnp.allclose(logvar, lv_ref, atol=1e-1, rtol=1e-1)

    print("KERNEL_OK")
</pallas_src>

<mosaic_0001>
module attributes {stable_mosaic.version = 11 : i64} {
  func.func @gcn_layer_kernel(%arg0: i32, %arg1: i32, %arg2: memref<256x256xbf16, #tpu.memory_space<vmem>>, %arg3: memref<256x128xbf16, #tpu.memory_space<vmem>>, %arg4: memref<128x128xbf16, #tpu.memory_space<vmem>>, %arg5: memref<1x128xf32, #tpu.memory_space<vmem>>, %arg6: memref<256x128xbf16, #tpu.memory_space<vmem>>, %arg7: memref<256x128xf32, #tpu.memory_space<vmem>>) attributes {dimension_semantics = [#tpu.dimension_semantics<parallel>, #tpu.dimension_semantics<arbitrary>], iteration_bounds = array<i64: 1, 1>, scalar_prefetch = 0 : i64, scratch_operands = 1 : i64, tpu.core_type = #tpu.core_type<tc>, window_params = [{transform_indices = @transform_0, window_bounds = array<i64: 256, 256>}, {transform_indices = @transform_1, window_bounds = array<i64: 256, 128>}, {pipeline_mode = #tpu.pipeline_mode<synchronous>, transform_indices = @transform_2, window_bounds = array<i64: 128, 128>}, {pipeline_mode = #tpu.pipeline_mode<synchronous>, transform_indices = @transform_3, window_bounds = array<i64: 1, 128>}, {transform_indices = @transform_4, window_bounds = array<i64: 256, 128>}]} {
    %c0_i32 = arith.constant 0 : i32
    %0 = arith.cmpi eq, %arg1, %c0_i32 : i32
    %1 = arith.extui %0 : i1 to i32
    %c0_i32_0 = arith.constant 0 : i32
    %2 = arith.cmpi ne, %1, %c0_i32_0 : i32
    scf.if %2 {
      %cst_13 = arith.constant 0.000000e+00 : f32
      %15 = vector.broadcast %cst_13 : f32 to vector<256x128xf32>
      %c0_14 = arith.constant 0 : index
      %c0_15 = arith.constant 0 : index
      %16 = vector.load %arg7[%c0_14, %c0_15] : memref<256x128xf32, #tpu.memory_space<vmem>>, vector<256x128xf32>
      tpu.vector_store %arg7[%c0_14, %c0_15], %15 {strides = array<i32>} : memref<256x128xf32, #tpu.memory_space<vmem>>, vector<256x128xf32>,
    } else {
    }
    %c0 = arith.constant 0 : index
    %c0_1 = arith.constant 0 : index
    %3 = vector.load %arg3[%c0, %c0_1] : memref<256x128xbf16, #tpu.memory_space<vmem>>, vector<256x128xbf16>
    %c0_2 = arith.constant 0 : index
    %c0_3 = arith.constant 0 : index
    %4 = vector.load %arg4[%c0_2, %c0_3] : memref<128x128xbf16, #tpu.memory_space<vmem>>, vector<128x128xbf16>
    %cst = arith.constant dense<0.000000e+00> : vector<256x128xf32>
    %5 = tpu.matmul %3, %4, %cst {dimension_numbers = #tpu.dot_dimension_numbers<[1], [0], [0], [1], [0, 0, 1, 1], [], []>} : vector<256x128xbf16>, vector<128x128xbf16>, vector<256x128xf32> -> vector<256x128xf32>
    %c0_4 = arith.constant 0 : index
    %c0_5 = arith.constant 0 : index
    %6 = vector.load %arg7[%c0_4, %c0_5] : memref<256x128xf32, #tpu.memory_space<vmem>>, vector<256x128xf32>
    %c0_6 = arith.constant 0 : index
    %c0_7 = arith.constant 0 : index
    %7 = vector.load %arg2[%c0_6, %c0_7] : memref<256x256xbf16, #tpu.memory_space<vmem>>, vector<256x256xbf16>
    %8 = arith.truncf %5 : vector<256x128xf32> to vector<256x128xbf16>
    %cst_8 = arith.constant dense<0.000000e+00> : vector<256x128xf32>
    %9 = tpu.matmul %7, %8, %cst_8 {dimension_numbers = #tpu.dot_dimension_numbers<[1], [0], [0], [1], [0, 0, 1, 1], [], []>} : vector<256x256xbf16>, vector<256x128xbf16>, vector<256x128xf32> -> vector<256x128xf32>
    %10 = arith.addf %6, %9 : vector<256x128xf32>
    %c0_9 = arith.constant 0 : index
    %c0_10 = arith.constant 0 : index
    %11 = vector.load %arg7[%c0_9, %c0_10] : memref<256x128xf32, #tpu.memory_space<vmem>>, vector<256x128xf32>
    tpu.vector_store %arg7[%c0_9, %c0_10], %10 {strides = array<i32>} : memref<256x128xf32, #tpu.memory_space<vmem>>, vector<256x128xf32>,
    %c0_i32_11 = arith.constant 0 : i32
    %12 = arith.cmpi eq, %arg1, %c0_i32_11 : i32
    %13 = arith.extui %12 : i1 to i32
    %c0_i32_12 = arith.constant 0 : i32
    %14 = arith.cmpi ne, %13, %c0_i32_12 : i32
    scf.if %14 {
      %c0_13 = arith.constant 0 : index
      %c0_14 = arith.constant 0 : index
      %15 = vector.load %arg7[%c0_13, %c0_14] : memref<256x128xf32, #tpu.memory_space<vmem>>, vector<256x128xf32>
      %c0_15 = arith.constant 0 : index
      %c0_16 = arith.constant 0 : index
      %16 = vector.load %arg5[%c0_15, %c0_16] : memref<1x128xf32, #tpu.memory_space<vmem>>, vector<1x128xf32>
      %17 = vector.broadcast %16 : vector<1x128xf32> to vector<256x128xf32>
      %18 = arith.addf %15, %17 : vector<256x128xf32>
      %cst_17 = arith.constant 0.000000e+00 : f32
      %19 = vector.broadcast %cst_17 : f32 to vector<256x128xf32>
      %20 = arith.maximumf %18, %19 : vector<256x128xf32>
      %21 = arith.truncf %20 : vector<256x128xf32> to vector<256x128xbf16>
      %c0_18 = arith.constant 0 : index
      %c0_19 = arith.constant 0 : index
      %22 = vector.load %arg6[%c0_18, %c0_19] : memref<256x128xbf16, #tpu.memory_space<vmem>>, vector<256x128xbf16>
      tpu.vector_store %arg6[%c0_18, %c0_19], %21 {strides = array<i32>} : memref<256x128xbf16, #tpu.memory_space<vmem>>, vector<256x128xbf16>,
    } else {
    }
    return
  }
  func.func @transform_0(%arg0: i32, %arg1: i32) -> (i32, i32) {
    %c0_i32 = arith.constant 0 : i32
    return %arg0, %arg1 : i32, i32
  }
  func.func @transform_1(%arg0: i32, %arg1: i32) -> (i32, i32) {
    %c0_i32 = arith.constant 0 : i32
    %c0_i32_0 = arith.constant 0 : i32
    return %arg1, %c0_i32 : i32, i32
  }
  func.func @transform_2(%arg0: i32, %arg1: i32) -> (i32, i32) {
    %c0_i32 = arith.constant 0 : i32
    %c0_i32_0 = arith.constant 0 : i32
    %c0_i32_1 = arith.constant 0 : i32
    return %c0_i32, %c0_i32_0 : i32, i32
  }
  func.func @transform_3(%arg0: i32, %arg1: i32) -> (i32, i32) {
    %c0_i32 = arith.constant 0 : i32
    %c0_i32_0 = arith.constant 0 : i32
    %c0_i32_1 = arith.constant 0 : i32
    return %c0_i32, %c0_i32_0 : i32, i32
  }
  func.func @transform_4(%arg0: i32, %arg1: i32) -> (i32, i32) {
    %c0_i32 = arith.constant 0 : i32
    %c0_i32_0 = arith.constant 0 : i32
    return %arg0, %c0_i32 : i32, i32
  }
}

</mosaic_0001>

<bundles_post_ra>
// kernel: tpu_custom_call.1
= control target key start
LH: loop header
LB: loop body
LE: loop exit
PB: predicated region body
PF: predicated region fallthrough
CT: control target
= control target key end

     0   :  { %9 = vsyncpa [#allocation4], 0  ;;  %s1915_s0 = inlined_call_operand.hbm [shape: bf16[256,256], index: 0, kind: input, shape index: {}]   ;;  %s1916_s1 = inlined_call_operand.hbm [shape: bf16[256,128], index: 1, kind: input, shape index: {}]   ;;  %s1917_s2 = inlined_call_operand.hbm [shape: bf16[128,128], index: 2, kind: input, shape index: {}]   ;;  %s1918_s3 = inlined_call_operand.vmem [shape: f32[1,128], index: 3, kind: input, shape index: {}]   ;;  %s1919_s4 = inlined_call_operand.hbm [shape: bf16[256,128], index: 4, kind: output, shape index: {}]  }
   0x1   :  { %10 = vsyncpa [#allocation7], 0 }
   0x2   :  { %11 = vsyncpa [#allocation5], 0  ;;  %s1788_s15 = smov [#allocation6]   ;;  %s1694_s19 = scalar_lea.hbm %s1916_s1, 2048 }
   0x3   :  { %s29_s16 = sshll.u32 %s1788_s15, 4  ;;  %p1695_p0 = scmp.ne.s32.totalorder %s1916_s1, %s1694_s19  ;;  %s30_s16 = int_to_ptr.vmem [resolvable:$true] %s29_s16 }
   0x4   :  { %p1698_p1 = scmp.lt.u32.totalorder %s1694_s19, %s1916_s1 }
   0x6   :  { %p1700_p2 = pnand %p1698_p1, %p1695_p0 }
   0x8   :  { %1703 = shalt.err (!%p1700_p2)
}
   0x9   :  { %s1704_s24 = scalar_lea.vmem %s30_s16, 2048  ;;  %p1709_p4 = scmp.lt.s32.totalorder %s30_s16, %s30_s16 }
   0xa   :  { %p1705_p3 = scmp.ne.s32.totalorder %s30_s16, %s1704_s24  ;;  %p1710_p5 = scmp.lt.s32.totalorder %s1704_s24, %s1704_s24 }
   0xc   :  { %p1711_p6 = por %p1710_p5, %p1709_p4 }
   0xe   :  { %p1712_p7 = pnand %p1711_p6, %p1705_p3 }
  0x10   :  { %1715 = shalt.err (!%p1712_p7)
}
  0x11   :  { %s1789_s25 = smov 64   ;;  %s1790_s26 = smov 4  }
  0x12   :  { %35 = dma.hbm_to_vmem [thread:$0]  %s1916_s1, 2048, %s30_s16, [#allocation7], %s1789_s25, %s1789_s25, %s1790_s26  }
  0x13   :  { %s1791_s29 = smov [#allocation3]   ;;  %s1716_s7 = scalar_lea.hbm %s1915_s0, 4096 }
  0x14   :  { %s17_s30 = sshll.u32 %s1791_s29, 4  ;;  %p1717_p8 = scmp.ne.s32.totalorder %s1915_s0, %s1716_s7  ;;  %s18_s30 = int_to_ptr.vmem [resolvable:$true] %s17_s30 }
  0x15   :  { %p1720_p9 = scmp.lt.u32.totalorder %s1716_s7, %s1915_s0 }
  0x17   :  { %p1722_p10 = pnand %p1720_p9, %p1717_p8 }
  0x19   :  { %1725 = shalt.err (!%p1722_p10)
}
  0x1a   :  { %s1726_s12 = scalar_lea.vmem %s18_s30, 4096  ;;  %p1731_p12 = scmp.lt.s32.totalorder %s18_s30, %s18_s30 }
  0x1b   :  { %p1727_p11 = scmp.ne.s32.totalorder %s18_s30, %s1726_s12  ;;  %p1732_p13 = scmp.lt.s32.totalorder %s1726_s12, %s1726_s12 }
  0x1d   :  { %p1733_p0 = por %p1732_p13, %p1731_p12 }
  0x1f   :  { %p1734_p1 = pnand %p1733_p0, %p1727_p11 }
  0x21   :  { %1737 = shalt.err (!%p1734_p1)
}
  0x22   :  { %s1792_s1 = smov 128   ;;  %s1793_s13 = smov 8  }
  0x23   :  { %23 = dma.hbm_to_vmem [thread:$0]  %s1915_s0, 4096, %s18_s30, [#allocation4], %s1792_s1, %s1792_s1, %s1793_s13  }
  0x24   :  { %s1794_s16 = smov [#allocation8]   ;;  %s1738_s20 = scalar_lea.hbm %s1917_s2, 1024 }
  0x25   :  { %s41_s17 = sshll.u32 %s1794_s16, 4  ;;  %p1739_p2 = scmp.ne.s32.totalorder %s1917_s2, %s1738_s20  ;;  %s42_s17 = int_to_ptr.vmem [resolvable:$true] %s41_s17 }
  0x26   :  { %p1742_p3 = scmp.lt.u32.totalorder %s1738_s20, %s1917_s2 }
  0x28   :  { %p1744_p4 = pnand %p1742_p3, %p1739_p2 }
  0x2a   :  { %1747 = shalt.err (!%p1744_p4)
}
  0x2b   :  { %s1748_s27 = scalar_lea.vmem %s42_s17, 1024  ;;  %p1753_p6 = scmp.lt.s32.totalorder %s42_s17, %s42_s17 }
  0x2c   :  { %p1749_p5 = scmp.ne.s32.totalorder %s42_s17, %s1748_s27  ;;  %p1754_p7 = scmp.lt.s32.totalorder %s1748_s27, %s1748_s27 }
  0x2e   :  { %p1755_p8 = por %p1754_p7, %p1753_p6 }
  0x30   :  { %p1756_p9 = pnand %p1755_p8, %p1749_p5 }
  0x32   :  { %1759 = shalt.err (!%p1756_p9)
}
  0x33   :  { %47 = dma.hbm_to_vmem [thread:$0]  %s1917_s2, 1024, %s42_s17, [#allocation7], %s1789_s25, %s1789_s25, %s1790_s26  }
  0x34   :  { %1782 = dma.done.wait [#allocation4], 4096  }
  0x35   :  { %1783 = vsyncadd [#allocation4], 4294963200 }
  0x36   :  { %1784 = dma.done.wait [#allocation7], 3072  }
  0x37   :  { %1785 = vsyncadd [#allocation7], 4294964224  ;;  %v1622_v0 = vld [vmem:[#allocation8] sm:$0xff]   ;;  %v1623_v1 = vld [vmem:[#allocation8 + $0x8] sm:$0xff]  }
  0x38   :  { %1550 = vmatprep.subr.bf16.mxu0 %v1622_v0  ;;  %v1624_v2 = vld [vmem:[#allocation8 + $0x10] sm:$0xff]   ;;  %v1625_v3 = vld [vmem:[#allocation8 + $0x18] sm:$0xff]   ;;  %v1630_v4 = vld [vmem:[#allocation6] sm:$0xff]  }
  0x39   :  { %1551 = vmatpush3.bf16.msra.mxu0 %v1622_v0  ;;  %1566 = vmatprep.mubr.bf16.mxu0 %v1630_v4  ;;  %v1626_v5 = vld [vmem:[#allocation8 + $0x20] sm:$0xff]   ;;  %v1627_v6 = vld [vmem:[#allocation8 + $0x28] sm:$0xff]   ;;  %v1628_v7 = vld [vmem:[#allocation8 + $0x30] sm:$0xff]  }
  0x3a   :  { %1552 = vmatprep.subr.bf16.mxu0 %v1623_v1  ;;  %v1629_v8 = vld [vmem:[#allocation8 + $0x38] sm:$0xff]   ;;  %v1631_v9 = vld [vmem:[#allocation6 + $0x8] sm:$0xff]   ;;  %v1632_v10 = vld [vmem:[#allocation6 + $0x10] sm:$0xff]  }
  0x3b   :  { %v1633_v11 = vld [vmem:[#allocation6 + $0x18] sm:$0xff]   ;;  %v1634_v12 = vld [vmem:[#allocation6 + $0x20] sm:$0xff]   ;;  %v1635_v13 = vld [vmem:[#allocation6 + $0x28] sm:$0xff]  }
  0x3c   :  { %v1636_v14 = vld [vmem:[#allocation6 + $0x30] sm:$0xff]   ;;  %v1637_v15 = vld [vmem:[#allocation6 + $0x38] sm:$0xff]   ;;  %v1638_v16 = vld [vmem:[#allocation6 + $0x40] sm:$0xff]  }
  0x3d   :  { %1553 = vmatpush3.bf16.msra.mxu0 %v1623_v1  ;;  %v1639_v17 = vld [vmem:[#allocation6 + $0x48] sm:$0xff]   ;;  %v1640_v18 = vld [vmem:[#allocation6 + $0x50] sm:$0xff]   ;;  %v1641_v19 = vld [vmem:[#allocation6 + $0x58] sm:$0xff]  }
  0x3e   :  { %1554 = vmatprep.subr.bf16.mxu0 %v1624_v2  ;;  %v1642_v20 = vld [vmem:[#allocation6 + $0x60] sm:$0xff]   ;;  %v1643_v21 = vld [vmem:[#allocation6 + $0x68] sm:$0xff]   ;;  %v1644_v22 = vld [vmem:[#allocation6 + $0x70] sm:$0xff]  }
  0x3f   :  { %v1645_v23 = vld [vmem:[#allocation6 + $0x78] sm:$0xff]   ;;  %v1648_v24 = vld [vmem:[#allocation3 + $0x44] ss:$8 sps:$4 sm:$0xff]  }
  0x40   :  { %753 = vmatprep.mubr.bf16.mxu1 %v1648_v24  ;;  %v1672_v25 = vld [vmem:[#allocation3 + $0x4] ss:$8 sps:$4 sm:$0xff]  }
  0x41   :  { %1555 = vmatpush3.bf16.msra.mxu0 %v1624_v2  ;;  %v1658_v24 = vld [vmem:[#allocation3 + $0x84] ss:$8 sps:$4 sm:$0xff]  }
  0x42   :  { %1556 = vmatprep.subr.bf16.mxu0 %v1625_v3 }
  0x45   :  { %1557 = vmatpush3.bf16.msra.mxu0 %v1625_v3 }
  0x46   :  { %1558 = vmatprep.subr.bf16.mxu0 %v1626_v5 }
  0x49   :  { %1559 = vmatpush3.bf16.msra.mxu0 %v1626_v5 }
  0x4a   :  { %1560 = vmatprep.subr.bf16.mxu0 %v1627_v6 }
  0x4d   :  { %1561 = vmatpush3.bf16.msra.mxu0 %v1627_v6 }
  0x4e   :  { %1562 = vmatprep.subr.bf16.mxu0 %v1628_v7 }
  0x51   :  { %1563 = vmatpush3.bf16.msra.mxu0 %v1628_v7 }
  0x52   :  { %1564 = vmatprep.subr.bf16.mxu0 %v1629_v8 }
  0x55   :  { %1565 = vmatpush3.bf16.msra.mxu0 %v1629_v8 }
  0x58   :  { %1567 = vmatmul.mubr.bf16.vlgmr.msra.gmra.mrb[0].mxu0 %v1631_v9 }
  0x59   :  { %1570 = vmatprep.mubr.bf16.mxu0 %v1632_v10  ;;  %v1646_v10 = vld [vmem:[#allocation3 + $0x40] ss:$8 sps:$4 sm:$0xff]  }
  0x60   :  { %1571 = vmatmul.mubr.bf16.gmra.mrb[4].mxu0 %v1633_v11  ;;  %v1670_v11 = vld [vmem:[#allocation3] ss:$8 sps:$4 sm:$0xff]  }
  0x61   :  { %1574 = vmatprep.mubr.bf16.mxu0 %v1634_v12  ;;  %v1649_v12 = vld [vmem:[#allocation3 + $0x54] ss:$8 sps:$4 sm:$0xff]  }
  0x68   :  { %1575 = vmatmul.mubr.bf16.gmra.mrb[8].mxu0 %v1635_v13  ;;  %v1676_v13 = vld [vmem:[#allocation3 + $0x14] ss:$8 sps:$4 sm:$0xff]  }
  0x69   :  { %1578 = vmatprep.mubr.bf16.mxu0 %v1636_v14  ;;  %v1651_v14 = vld [vmem:[#allocation3 + $0x50] ss:$8 sps:$4 sm:$0xff]  }
  0x70   :  { %1579 = vmatmul.mubr.bf16.gmra.mrb[12].mxu0 %v1637_v15  ;;  %v1678_v15 = vld [vmem:[#allocation3 + $0x10] ss:$8 sps:$4 sm:$0xff]  }
  0x71   :  { %1582 = vmatprep.mubr.bf16.mxu0 %v1638_v16  ;;  %v1652_v16 = vld [vmem:[#allocation3 + $0x64] ss:$8 sps:$4 sm:$0xff]  }
  0x78   :  { %1583 = vmatmul.mubr.bf16.gmra.mrb[16].mxu0 %v1639_v17  ;;  %v1682_v17 = vld [vmem:[#allocation3 + $0x24] ss:$8 sps:$4 sm:$0xff]  }
  0x79   :  { %1586 = vmatprep.mubr.bf16.mxu0 %v1640_v18  ;;  %v1654_v18 = vld [vmem:[#allocation3 + $0x60] ss:$8 sps:$4 sm:$0xff]  }
  0x80   :  { %1587 = vmatmul.mubr.bf16.gmra.mrb[20].mxu0 %v1641_v19  ;;  %v1684_v19 = vld [vmem:[#allocation3 + $0x20] ss:$8 sps:$4 sm:$0xff]  }
  0x81   :  { %1590 = vmatprep.mubr.bf16.mxu0 %v1642_v20  ;;  %v1655_v20 = vld [vmem:[#allocation3 + $0x74] ss:$8 sps:$4 sm:$0xff]  }
  0x88   :  { %1591 = vmatmul.mubr.bf16.gmra.mrb[24].mxu0 %v1643_v21  ;;  %v1688_v21 = vld [vmem:[#allocation3 + $0x34] ss:$8 sps:$4 sm:$0xff]  }
  0x89   :  { %1594 = vmatprep.mubr.bf16.mxu0 %v1644_v22  ;;  %v1657_v22 = vld [vmem:[#allocation3 + $0x70] ss:$8 sps:$4 sm:$0xff]  }
  0x90   :  { %1595 = vmatmul.mubr.bf16.gmra.mrb[28].mxu0 %v1645_v23  ;;  %v1690_v23 = vld [vmem:[#allocation3 + $0x30] ss:$8 sps:$4 sm:$0xff]  }
  0x91   :  { %721 = vmatprep.mubr.bf16.mxu0 %v1672_v25  ;;  %v1660_v25 = vld [vmem:[#allocation3 + $0x80] ss:$8 sps:$4 sm:$0xff]  }
 0x12b   :  { %v1568_v26 = vpop.f32.mrb[0].mxu0 }
 0x12c   :  { %v322_v27 = vpop.f32.mrb[1].mxu0 }
 0x12d   :  { %v1569_v28 = vpop.f32.mrb[2].mxu0 }
 0x12e   :  { %v514_v29 = vpack.c.bf16 %v1569_v28, %v1568_v26  ;;  %v325_v30 = vpop.f32.mrb[3].mxu0  ;;  %v1661_v26 = vld [vmem:[#allocation3 + $0x94] ss:$8 sps:$4 sm:$0xff]   ;;  %v1664_v28 = vld [vmem:[#allocation3 + $0xa4] ss:$8 sps:$4 sm:$0xff]  }
 0x12f   :  { %v513_v31 = vpack.c.bf16 %v325_v30, %v322_v27  ;;  %v1663_v27 = vld [vmem:[#allocation3 + $0x90] ss:$8 sps:$4 sm:$0xff]   ;;  %v1667_v30 = vld [vmem:[#allocation3 + $0xb4] ss:$8 sps:$4 sm:$0xff]  }
 0x133   :  { %v1572_v32 = vpop.f32.mrb[4].mxu0 }
 0x134   :  { %v338_v33 = vpop.f32.mrb[5].mxu0 }
 0x135   :  { %v1573_v34 = vpop.f32.mrb[6].mxu0 }
 0x136   :  { %v516_v35 = vpack.c.bf16 %v1573_v34, %v1572_v32  ;;  %v341_v36 = vpop.f32.mrb[7].mxu0  ;;  %v1673_v32 = vld [vmem:[#allocation3 + $0xc4] ss:$8 sps:$4 sm:$0xff]   ;;  %v1679_v34 = vld [vmem:[#allocation3 + $0xd4] ss:$8 sps:$4 sm:$0xff]  }
 0x137   :  { %v515_v37 = vpack.c.bf16 %v341_v36, %v338_v33  ;;  %v1675_v33 = vld [vmem:[#allocation3 + $0xc0] ss:$8 sps:$4 sm:$0xff]   ;;  %v1685_v36 = vld [vmem:[#allocation3 + $0xe4] ss:$8 sps:$4 sm:$0xff]  }
 0x13b   :  { %v1576_v38 = vpop.f32.mrb[8].mxu0 }
 0x13c   :  { %v354_v39 = vpop.f32.mrb[9].mxu0 }
 0x13d   :  { %v1577_v40 = vpop.f32.mrb[10].mxu0 }
 0x13e   :  { %v518_v41 = vpack.c.bf16 %v1577_v40, %v1576_v38  ;;  %v357_v42 = vpop.f32.mrb[11].mxu0  ;;  %v1691_v38 = vld [vmem:[#allocation3 + $0xf4] ss:$8 sps:$4 sm:$0xff]  }
 0x13f   :  { %v517_v43 = vpack.c.bf16 %v357_v42, %v354_v39  ;;  %v1693_v39 = vld [vmem:[#allocation3 + $0xf0] ss:$8 sps:$4 sm:$0xff]  }
 0x143   :  { %v1580_v44 = vpop.f32.mrb[12].mxu0 }
 0x144   :  { %v370_v45 = vpop.f32.mrb[13].mxu0 }
 0x145   :  { %v1581_v46 = vpop.f32.mrb[14].mxu0 }
 0x146   :  { %v520_v47 = vpack.c.bf16 %v1581_v46, %v1580_v44  ;;  %v373_v48 = vpop.f32.mrb[15].mxu0 }
 0x147   :  { %v519_v49 = vpack.c.bf16 %v373_v48, %v370_v45 }
 0x14b   :  { %v1584_v50 = vpop.f32.mrb[16].mxu0 }
 0x14c   :  { %v386_v51 = vpop.f32.mrb[17].mxu0 }
 0x14d   :  { %v1585_v52 = vpop.f32.mrb[18].mxu0 }
 0x14e   :  { %v522_v53 = vpack.c.bf16 %v1585_v52, %v1584_v50  ;;  %v389_v54 = vpop.f32.mrb[19].mxu0 }
 0x14f   :  { %v521_v55 = vpack.c.bf16 %v389_v54, %v386_v51 }
 0x151   :  { %1438 = vmatprep.subr.bf16.mxu0 %v521_v55  ;;  %1598 = vmatprep.subr.bf16.mxu1 %v521_v55 }
 0x152   :  { %1439 = vmatpush3.bf16.msra.mxu0 %v513_v31  ;;  %1606 = vmatpush3.bf16.msra.mxu1 %v513_v31  ;;  %v1669_v31 = vld [vmem:[#allocation3 + $0xb0] ss:$8 sps:$4 sm:$0xff]  }
 0x153   :  { %v1588_v56 = vpop.f32.mrb[20].mxu0  ;;  %1440 = vmatprep.subr.bf16.mxu0 %v522_v53  ;;  %1599 = vmatprep.subr.bf16.mxu1 %v522_v53 }
 0x154   :  { %v402_v57 = vpop.f32.mrb[21].mxu0 }
 0x155   :  { %v1589_v58 = vpop.f32.mrb[22].mxu0 }
 0x156   :  { %v524_v59 = vpack.c.bf16 %v1589_v58, %v1588_v56  ;;  %v405_v60 = vpop.f32.mrb[23].mxu0  ;;  %1441 = vmatpush3.bf16.msra.mxu0 %v514_v29  ;;  %1607 = vmatpush3.bf16.msra.mxu1 %v514_v29  ;;  %v1666_v29 = vld [vmem:[#allocation3 + $0xa0] ss:$8 sps:$4 sm:$0xff]  }
 0x157   :  { %v523_v61 = vpack.c.bf16 %v405_v60, %v402_v57 }
 0x159   :  { %1442 = vmatprep.subr.bf16.mxu0 %v523_v61  ;;  %1600 = vmatprep.subr.bf16.mxu1 %v523_v61 }
 0x15a   :  { %1443 = vmatpush3.bf16.msra.mxu0 %v515_v37  ;;  %1608 = vmatpush3.bf16.msra.mxu1 %v515_v37  ;;  %v1687_v37 = vld [vmem:[#allocation3 + $0xe0] ss:$8 sps:$4 sm:$0xff]  }
 0x15b   :  { %v1592_v62 = vpop.f32.mrb[24].mxu0  ;;  %1444 = vmatprep.subr.bf16.mxu0 %v524_v59  ;;  %1601 = vmatprep.subr.bf16.mxu1 %v524_v59 }
 0x15c   :  { %v418_v63 = vpop.f32.mrb[25].mxu0 }
 0x15d   :  { %v1593_v0 = vpop.f32.mrb[26].mxu0 }
 0x15e   :  { %v526_v1 = vpack.c.bf16 %v1593_v0, %v1592_v62  ;;  %v421_v2 = vpop.f32.mrb[27].mxu0  ;;  %1445 = vmatpush3.bf16.msra.mxu0 %v516_v35  ;;  %1609 = vmatpush3.bf16.msra.mxu1 %v516_v35  ;;  %v1681_v35 = vld [vmem:[#allocation3 + $0xd0] ss:$8 sps:$4 sm:$0xff]  }
 0x15f   :  { %v525_v3 = vpack.c.bf16 %v421_v2, %v418_v63 }
 0x161   :  { %1446 = vmatprep.subr.bf16.mxu0 %v525_v3  ;;  %1602 = vmatprep.subr.bf16.mxu1 %v525_v3 }
 0x162   :  { %1447 = vmatpush3.bf16.msra.mxu0 %v517_v43  ;;  %1610 = vmatpush3.bf16.msra.mxu1 %v517_v43  ;;  %v1866_v43 = vld [vmem:[%s1918_s3] ss:$0 sm:$0xff]  ;;  %s1795_s3 = smov [#allocation9]  }
 0x163   :  { %v1596_v4 = vpop.f32.mrb[28].mxu0  ;;  %1448 = vmatprep.subr.bf16.mxu0 %v526_v1  ;;  %1603 = vmatprep.subr.bf16.mxu1 %v526_v1  ;;  %s1185_s30 = sshll.u32 %s1795_s3, 4  ;;  %s1186_s30 = int_to_ptr.vmem [resolvable:$true] %s1185_s30 }
 0x164   :  { %v434_v5 = vpop.f32.mrb[29].mxu0  ;;  %s1760_s5 = scalar_lea.vmem %s1186_s30, 2048  ;;  %p1765_p11 = scmp.lt.s32.totalorder %s1186_s30, %s1186_s30 }
 0x165   :  { %v1597_v6 = vpop.f32.mrb[30].mxu0  ;;  %p1761_p10 = scmp.ne.s32.totalorder %s1186_s30, %s1760_s5  ;;  %p1766_p12 = scmp.lt.s32.totalorder %s1760_s5, %s1760_s5 }
 0x166   :  { %v528_v7 = vpack.c.bf16 %v1597_v6, %v1596_v4  ;;  %v437_v8 = vpop.f32.mrb[31].mxu0  ;;  %1449 = vmatpush3.bf16.msra.mxu0 %v518_v41  ;;  %1611 = vmatpush3.bf16.msra.mxu1 %v518_v41 }
 0x167   :  { %v527_v9 = vpack.c.bf16 %v437_v8, %v434_v5  ;;  %p1767_p13 = por %p1766_p12, %p1765_p11 }
 0x169   :  { %1450 = vmatprep.subr.bf16.mxu0 %v527_v9  ;;  %1604 = vmatprep.subr.bf16.mxu1 %v527_v9  ;;  %p1768_p0 = pnand %p1767_p13, %p1761_p10 }
 0x16a   :  { %1451 = vmatpush3.bf16.msra.mxu0 %v519_v49  ;;  %1612 = vmatpush3.bf16.msra.mxu1 %v519_v49 }
 0x16b   :  { %1452 = vmatprep.subr.bf16.mxu0 %v528_v7  ;;  %1605 = vmatprep.subr.bf16.mxu1 %v528_v7 }
 0x16e   :  { %1453 = vmatpush3.bf16.msra.mxu0 %v520_v47  ;;  %1613 = vmatpush3.bf16.msra.mxu1 %v520_v47 }
 0x171   :  { %754 = vmatmul.mubr.bf16.vlgmr.msra.gmra.mrb[0].mxu1 %v1646_v10  ;;  %722 = vmatmul.mubr.bf16.vlgmr.msra.gmra.mrb[32].mxu0 %v1670_v11 }
 0x172   :  { %761 = vmatprep.mubr.bf16.mxu1 %v1649_v12  ;;  %729 = vmatprep.mubr.bf16.mxu0 %v1676_v13 }
 0x179   :  { %762 = vmatmul.mubr.bf16.gmra.mrb[4].mxu1 %v1651_v14  ;;  %730 = vmatmul.mubr.bf16.gmra.mrb[36].mxu0 %v1678_v15 }
 0x17a   :  { %769 = vmatprep.mubr.bf16.mxu1 %v1652_v16  ;;  %737 = vmatprep.mubr.bf16.mxu0 %v1682_v17 }
 0x181   :  { %770 = vmatmul.mubr.bf16.gmra.mrb[8].mxu1 %v1654_v18  ;;  %738 = vmatmul.mubr.bf16.gmra.mrb[40].mxu0 %v1684_v19 }
 0x182   :  { %777 = vmatprep.mubr.bf16.mxu1 %v1655_v20  ;;  %745 = vmatprep.mubr.bf16.mxu0 %v1688_v21 }
 0x189   :  { %778 = vmatmul.mubr.bf16.gmra.mrb[12].mxu1 %v1657_v22  ;;  %746 = vmatmul.mubr.bf16.gmra.mrb[44].mxu0 %v1690_v23 }
 0x18a   :  { %785 = vmatprep.mubr.bf16.mxu1 %v1658_v24 }
 0x191   :  { %786 = vmatmul.mubr.bf16.gmra.mrb[16].mxu1 %v1660_v25 }
 0x192   :  { %793 = vmatprep.mubr.bf16.mxu1 %v1661_v26 }
 0x199   :  { %794 = vmatmul.mubr.bf16.gmra.mrb[20].mxu1 %v1663_v27 }
 0x19a   :  { %801 = vmatprep.mubr.bf16.mxu1 %v1664_v28 }
 0x1a1   :  { %802 = vmatmul.mubr.bf16.gmra.mrb[24].mxu1 %v1666_v29 }
 0x1a2   :  { %809 = vmatprep.mubr.bf16.mxu1 %v1667_v30 }
 0x1a9   :  { %810 = vmatmul.mubr.bf16.gmra.mrb[28].mxu1 %v1669_v31 }
 0x1aa   :  { %817 = vmatprep.mubr.bf16.mxu1 %v1673_v32 }
 0x1b1   :  { %818 = vmatmul.mubr.bf16.gmra.mrb[32].mxu1 %v1675_v33 }
 0x1b2   :  { %825 = vmatprep.mubr.bf16.mxu1 %v1679_v34 }
 0x1b9   :  { %826 = vmatmul.mubr.bf16.gmra.mrb[36].mxu1 %v1681_v35 }
 0x1ba   :  { %833 = vmatprep.mubr.bf16.mxu1 %v1685_v36 }
 0x1c1   :  { %834 = vmatmul.mubr.bf16.gmra.mrb[40].mxu1 %v1687_v37 }
 0x1c2   :  { %841 = vmatprep.mubr.bf16.mxu1 %v1691_v38 }
 0x1c9   :  { %842 = vmatmul.mubr.bf16.gmra.mrb[44].mxu1 %v1693_v39 }
 0x244   :  { %v1478_v40 = vpop.f32.mrb[0].mxu1  ;;  %v1454_v41 = vpop.f32.mrb[32].mxu0 }
 0x245   :  { %v1479_v42 = vpop.f32.mrb[1].mxu1  ;;  %v1455_v44 = vpop.f32.mrb[33].mxu0 }
 0x246   :  { %v1480_v45 = vadd.f32 %v1479_v42, %v1478_v40  ;;  %v1481_v46 = vpop.f32.mrb[2].mxu1  ;;  %v1456_v47 = vadd.f32 %v1455_v44, %v1454_v41  ;;  %v1457_v48 = vpop.f32.mrb[34].mxu0 }
 0x247   :  { %v1482_v49 = vpop.f32.mrb[3].mxu1  ;;  %v1458_v50 = vpop.f32.mrb[35].mxu0 }
 0x248   :  { %v964_v51 = vadd.f32 %v1480_v45, %v1866_v43  ;;  %v1483_v52 = vadd.f32 %v1482_v49, %v1481_v46  ;;  %v956_v53 = vadd.f32 %v1456_v47, %v1866_v43  ;;  %v1459_v54 = vadd.f32 %v1458_v50, %v1457_v48 }
 0x24a   :  { %v965_v55 = vadd.f32 %v1483_v52, %v1866_v43  ;;  %v988_v56 = vmax.f32 %v956_v53, 0.0  ;;  %v957_v57 = vadd.f32 %v1459_v54, %v1866_v43  ;;  %v996_v58 = vmax.f32 %v964_v51, 0.0 }
 0x24c   :  { %v997_v59 = vmax.f32 %v965_v55, 0.0  ;;  %v1484_v60 = vpop.f32.mrb[4].mxu1  ;;  %v989_v61 = vmax.f32 %v957_v57, 0.0  ;;  %v1460_v62 = vpop.f32.mrb[36].mxu0 }
 0x24d   :  { %v1485_v63 = vpop.f32.mrb[5].mxu1  ;;  %v1461_v0 = vpop.f32.mrb[37].mxu0 }
 0x24e   :  { %v1342_v1 = vpack.c.bf16 %v997_v59, %v996_v58  ;;  %v1486_v2 = vadd.f32 %v1485_v63, %v1484_v60  ;;  %v1487_v3 = vpop.f32.mrb[6].mxu1  ;;  %v1322_v4 = vpack.c.bf16 %v989_v61, %v988_v56  ;;  %v1462_v5 = vadd.f32 %v1461_v0, %v1460_v62  ;;  %v1463_v6 = vpop.f32.mrb[38].mxu0 }
 0x24f   :  { %v1488_v7 = vpop.f32.mrb[7].mxu1  ;;  %v1464_v8 = vpop.f32.mrb[39].mxu0 }
 0x250   :  { %1402 = vst [vmem:[#allocation9 + $0x20] sm:$0xff] %v1342_v1   ;;  %v966_v9 = vadd.f32 %v1486_v2, %v1866_v43  ;;  %v1489_v10 = vadd.f32 %v1488_v7, %v1487_v3  ;;  %1323 = vst [vmem:[#allocation9] sm:$0xff] %v1322_v4   ;;  %v958_v11 = vadd.f32 %v1462_v5, %v1866_v43 }
 0x251   :  { %v1465_v12 = vadd.f32 %v1464_v8, %v1463_v6 }
 0x252   :  { %v967_v13 = vadd.f32 %v1489_v10, %v1866_v43  ;;  %v990_v14 = vmax.f32 %v958_v11, 0.0  ;;  %v998_v16 = vmax.f32 %v966_v9, 0.0 }
 0x253   :  { %v959_v15 = vadd.f32 %v1465_v12, %v1866_v43 }
 0x254   :  { %v999_v17 = vmax.f32 %v967_v13, 0.0  ;;  %v1490_v18 = vpop.f32.mrb[8].mxu1  ;;  %v1466_v20 = vpop.f32.mrb[40].mxu0 }
 0x255   :  { %v991_v19 = vmax.f32 %v959_v15, 0.0  ;;  %v1491_v21 = vpop.f32.mrb[9].mxu1  ;;  %v1467_v22 = vpop.f32.mrb[41].mxu0 }
 0x256   :  { %v1347_v23 = vpack.c.bf16 %v999_v17, %v998_v16  ;;  %v1492_v24 = vadd.f32 %v1491_v21, %v1490_v18  ;;  %v1493_v25 = vpop.f32.mrb[10].mxu1  ;;  %v1468_v27 = vadd.f32 %v1467_v22, %v1466_v20  ;;  %v1469_v28 = vpop.f32.mrb[42].mxu0 }
 0x257   :  { %v1327_v26 = vpack.c.bf16 %v991_v19, %v990_v14  ;;  %v1494_v29 = vpop.f32.mrb[11].mxu1  ;;  %v1470_v30 = vpop.f32.mrb[43].mxu0 }
 0x258   :  { %1403 = vst [vmem:[#allocation9 + $0x28] sm:$0xff] %v1347_v23   ;;  %v968_v31 = vadd.f32 %v1492_v24, %v1866_v43  ;;  %v1495_v32 = vadd.f32 %v1494_v29, %v1493_v25  ;;  %v960_v33 = vadd.f32 %v1468_v27, %v1866_v43  ;;  %v1471_v34 = vadd.f32 %v1470_v30, %v1469_v28 }
 0x259   :  { %1399 = vst [vmem:[#allocation9 + $0x8] sm:$0xff] %v1327_v26  }
 0x25a   :  { %v969_v35 = vadd.f32 %v1495_v32, %v1866_v43  ;;  %v992_v36 = vmax.f32 %v960_v33, 0.0  ;;  %v961_v37 = vadd.f32 %v1471_v34, %v1866_v43  ;;  %v1000_v38 = vmax.f32 %v968_v31, 0.0 }
 0x25c   :  { %v1001_v39 = vmax.f32 %v969_v35, 0.0  ;;  %v1496_v40 = vpop.f32.mrb[12].mxu1  ;;  %v993_v41 = vmax.f32 %v961_v37, 0.0  ;;  %v1472_v42 = vpop.f32.mrb[44].mxu0 }
 0x25d   :  { %v1497_v44 = vpop.f32.mrb[13].mxu1  ;;  %v1473_v45 = vpop.f32.mrb[45].mxu0 }
 0x25e   :  { %v1352_v46 = vpack.c.bf16 %v1001_v39, %v1000_v38  ;;  %v1498_v47 = vadd.f32 %v1497_v44, %v1496_v40  ;;  %v1499_v48 = vpop.f32.mrb[14].mxu1  ;;  %v1332_v49 = vpack.c.bf16 %v993_v41, %v992_v36  ;;  %v1474_v50 = vadd.f32 %v1473_v45, %v1472_v42  ;;  %v1475_v51 = vpop.f32.mrb[46].mxu0 }
 0x25f   :  { %v1500_v52 = vpop.f32.mrb[15].mxu1  ;;  %v1476_v53 = vpop.f32.mrb[47].mxu0 }
 0x260   :  { %1404 = vst [vmem:[#allocation9 + $0x30] sm:$0xff] %v1352_v46   ;;  %v970_v54 = vadd.f32 %v1498_v47, %v1866_v43  ;;  %v1501_v55 = vadd.f32 %v1500_v52, %v1499_v48  ;;  %1400 = vst [vmem:[#allocation9 + $0x10] sm:$0xff] %v1332_v49   ;;  %v962_v56 = vadd.f32 %v1474_v50, %v1866_v43 }
 0x261   :  { %v1477_v57 = vadd.f32 %v1476_v53, %v1475_v51 }
 0x262   :  { %v971_v58 = vadd.f32 %v1501_v55, %v1866_v43  ;;  %v994_v59 = vmax.f32 %v962_v56, 0.0  ;;  %v1002_v61 = vmax.f32 %v970_v54, 0.0 }
 0x263   :  { %v963_v60 = vadd.f32 %v1477_v57, %v1866_v43 }
 0x264   :  { %v1003_v62 = vmax.f32 %v971_v58, 0.0  ;;  %v1502_v63 = vpop.f32.mrb[16].mxu1 }
 0x265   :  { %v995_v0 = vmax.f32 %v963_v60, 0.0  ;;  %v1503_v1 = vpop.f32.mrb[17].mxu1 }
 0x266   :  { %v1357_v2 = vpack.c.bf16 %v1003_v62, %v1002_v61  ;;  %v1504_v3 = vadd.f32 %v1503_v1, %v1502_v63  ;;  %v1505_v4 = vpop.f32.mrb[18].mxu1 }
 0x267   :  { %v1337_v5 = vpack.c.bf16 %v995_v0, %v994_v59  ;;  %v1506_v6 = vpop.f32.mrb[19].mxu1 }
 0x268   :  { %1405 = vst [vmem:[#allocation9 + $0x38] sm:$0xff] %v1357_v2   ;;  %v972_v7 = vadd.f32 %v1504_v3, %v1866_v43  ;;  %v1507_v8 = vadd.f32 %v1506_v6, %v1505_v4 }
 0x269   :  { %1401 = vst [vmem:[#allocation9 + $0x18] sm:$0xff] %v1337_v5  }
 0x26a   :  { %v973_v9 = vadd.f32 %v1507_v8, %v1866_v43  ;;  %v1004_v10 = vmax.f32 %v972_v7, 0.0 }
 0x26c   :  { %v1005_v11 = vmax.f32 %v973_v9, 0.0  ;;  %v1508_v12 = vpop.f32.mrb[20].mxu1 }
 0x26d   :  { %v1509_v13 = vpop.f32.mrb[21].mxu1 }
 0x26e   :  { %v1362_v14 = vpack.c.bf16 %v1005_v11, %v1004_v10  ;;  %v1510_v15 = vadd.f32 %v1509_v13, %v1508_v12  ;;  %v1511_v16 = vpop.f32.mrb[22].mxu1 }
 0x26f   :  { %v1512_v17 = vpop.f32.mrb[23].mxu1 }
 0x270   :  { %1406 = vst [vmem:[#allocation9 + $0x40] sm:$0xff] %v1362_v14   ;;  %v974_v18 = vadd.f32 %v1510_v15, %v1866_v43  ;;  %v1513_v19 = vadd.f32 %v1512_v17, %v1511_v16 }
 0x272   :  { %v975_v20 = vadd.f32 %v1513_v19, %v1866_v43  ;;  %v1006_v21 = vmax.f32 %v974_v18, 0.0 }
 0x274   :  { %v1007_v22 = vmax.f32 %v975_v20, 0.0  ;;  %v1514_v23 = vpop.f32.mrb[24].mxu1 }
 0x275   :  { %v1515_v24 = vpop.f32.mrb[25].mxu1 }
 0x276   :  { %v1367_v25 = vpack.c.bf16 %v1007_v22, %v1006_v21  ;;  %v1516_v26 = vadd.f32 %v1515_v24, %v1514_v23  ;;  %v1517_v27 = vpop.f32.mrb[26].mxu1 }
 0x277   :  { %v1518_v28 = vpop.f32.mrb[27].mxu1 }
 0x278   :  { %1407 = vst [vmem:[#allocation9 + $0x48] sm:$0xff] %v1367_v25   ;;  %v976_v29 = vadd.f32 %v1516_v26, %v1866_v43  ;;  %v1519_v30 = vadd.f32 %v1518_v28, %v1517_v27 }
 0x27a   :  { %v977_v31 = vadd.f32 %v1519_v30, %v1866_v43  ;;  %v1008_v32 = vmax.f32 %v976_v29, 0.0 }
 0x27c   :  { %v1009_v33 = vmax.f32 %v977_v31, 0.0  ;;  %v1520_v34 = vpop.f32.mrb[28].mxu1 }
 0x27d   :  { %v1521_v35 = vpop.f32.mrb[29].mxu1 }
 0x27e   :  { %v1372_v36 = vpack.c.bf16 %v1009_v33, %v1008_v32  ;;  %v1522_v37 = vadd.f32 %v1521_v35, %v1520_v34  ;;  %v1523_v38 = vpop.f32.mrb[30].mxu1 }
 0x27f   :  { %v1524_v39 = vpop.f32.mrb[31].mxu1 }
 0x280   :  { %1408 = vst [vmem:[#allocation9 + $0x50] sm:$0xff] %v1372_v36   ;;  %v978_v40 = vadd.f32 %v1522_v37, %v1866_v43  ;;  %v1525_v41 = vadd.f32 %v1524_v39, %v1523_v38 }
 0x282   :  { %v979_v42 = vadd.f32 %v1525_v41, %v1866_v43  ;;  %v1010_v44 = vmax.f32 %v978_v40, 0.0 }
 0x284   :  { %v1011_v45 = vmax.f32 %v979_v42, 0.0  ;;  %v1526_v46 = vpop.f32.mrb[32].mxu1 }
 0x285   :  { %v1527_v47 = vpop.f32.mrb[33].mxu1 }
 0x286   :  { %v1377_v48 = vpack.c.bf16 %v1011_v45, %v1010_v44  ;;  %v1528_v49 = vadd.f32 %v1527_v47, %v1526_v46  ;;  %v1529_v50 = vpop.f32.mrb[34].mxu1 }
 0x287   :  { %v1530_v51 = vpop.f32.mrb[35].mxu1 }
 0x288   :  { %1409 = vst [vmem:[#allocation9 + $0x58] sm:$0xff] %v1377_v48   ;;  %v980_v52 = vadd.f32 %v1528_v49, %v1866_v43  ;;  %v1531_v53 = vadd.f32 %v1530_v51, %v1529_v50 }
 0x28a   :  { %v981_v54 = vadd.f32 %v1531_v53, %v1866_v43  ;;  %v1012_v55 = vmax.f32 %v980_v52, 0.0 }
 0x28c   :  { %v1013_v56 = vmax.f32 %v981_v54, 0.0  ;;  %v1532_v57 = vpop.f32.mrb[36].mxu1 }
 0x28d   :  { %v1533_v58 = vpop.f32.mrb[37].mxu1 }
 0x28e   :  { %v1382_v59 = vpack.c.bf16 %v1013_v56, %v1012_v55  ;;  %v1534_v60 = vadd.f32 %v1533_v58, %v1532_v57  ;;  %v1535_v61 = vpop.f32.mrb[38].mxu1 }
 0x28f   :  { %v1536_v62 = vpop.f32.mrb[39].mxu1 }
 0x290   :  { %1410 = vst [vmem:[#allocation9 + $0x60] sm:$0xff] %v1382_v59   ;;  %v982_v63 = vadd.f32 %v1534_v60, %v1866_v43  ;;  %v1537_v0 = vadd.f32 %v1536_v62, %v1535_v61 }
 0x292   :  { %v983_v1 = vadd.f32 %v1537_v0, %v1866_v43  ;;  %v1014_v2 = vmax.f32 %v982_v63, 0.0 }
 0x294   :  { %v1015_v3 = vmax.f32 %v983_v1, 0.0  ;;  %v1538_v4 = vpop.f32.mrb[40].mxu1 }
 0x295   :  { %v1539_v5 = vpop.f32.mrb[41].mxu1 }
 0x296   :  { %v1387_v6 = vpack.c.bf16 %v1015_v3, %v1014_v2  ;;  %v1540_v7 = vadd.f32 %v1539_v5, %v1538_v4  ;;  %v1541_v8 = vpop.f32.mrb[42].mxu1 }
 0x297   :  { %v1542_v9 = vpop.f32.mrb[43].mxu1 }
 0x298   :  { %1411 = vst [vmem:[#allocation9 + $0x68] sm:$0xff] %v1387_v6   ;;  %v984_v10 = vadd.f32 %v1540_v7, %v1866_v43  ;;  %v1543_v11 = vadd.f32 %v1542_v9, %v1541_v8 }
 0x29a   :  { %v985_v12 = vadd.f32 %v1543_v11, %v1866_v43  ;;  %v1016_v13 = vmax.f32 %v984_v10, 0.0 }
 0x29c   :  { %v1017_v14 = vmax.f32 %v985_v12, 0.0  ;;  %v1544_v15 = vpop.f32.mrb[44].mxu1 }
 0x29d   :  { %v1545_v16 = vpop.f32.mrb[45].mxu1 }
 0x29e   :  { %v1392_v17 = vpack.c.bf16 %v1017_v14, %v1016_v13  ;;  %v1546_v18 = vadd.f32 %v1545_v16, %v1544_v15  ;;  %v1547_v19 = vpop.f32.mrb[46].mxu1 }
 0x29f   :  { %v1548_v20 = vpop.f32.mrb[47].mxu1 }
 0x2a0   :  { %1412 = vst [vmem:[#allocation9 + $0x70] sm:$0xff] %v1392_v17   ;;  %v986_v21 = vadd.f32 %v1546_v18, %v1866_v43  ;;  %v1549_v22 = vadd.f32 %v1548_v20, %v1547_v19 }
 0x2a2   :  { %v987_v23 = vadd.f32 %v1549_v22, %v1866_v43  ;;  %v1018_v24 = vmax.f32 %v986_v21, 0.0 }
 0x2a4   :  { %v1019_v25 = vmax.f32 %v987_v23, 0.0 }
 0x2a6   :  { %v1397_v26 = vpack.c.bf16 %v1019_v25, %v1018_v24 }
 0x2a8   :  { %1413 = vst [vmem:[#allocation9 + $0x78] sm:$0xff] %v1397_v26  }
 0x2a9   :  { %1771 = shalt.err (!%p1768_p0)
}
 0x2aa   :  { %s1772_s8 = scalar_lea.hbm %s1919_s4, 2048 }
 0x2ab   :  { %p1773_p1 = scmp.ne.s32.totalorder %s1919_s4, %s1772_s8  ;;  %p1776_p2 = scmp.lt.u32.totalorder %s1772_s8, %s1919_s4 }
 0x2ad   :  { %p1778_p3 = pnand %p1776_p2, %p1773_p1 }
 0x2af   :  { %1781 = shalt.err (!%p1778_p3)
}
 0x2b0   :  { %1191 = dma.vmem_to_hbm [thread:$0]  %s1186_s30, 2048, %s1919_s4, [#allocation5], %s1789_s25, %s1789_s25, %s1790_s26  }
 0x2b1   :  { %1786 = dma.done.wait [#allocation5], 2048  }
 0x2b2   :  { %1787 = vsyncadd [#allocation5], 4294965248 }
 0x2b3   :  { %1195 = vsyncpa [#allocation4], 1 }
 0x2b4   :  { %1196 = vsyncpa [#allocation7], 1 }
 0x2b5   :  { %1197 = vsyncpa [#allocation5], 1 }

</bundles_post_ra>
